<compile_context>
chip_gen: v6e
topology: v6e:2x2x1
jax: 0.10.0
libtpu: 0.0.40
codegen_flags: <defaults>
</compile_context>

<pallas_src>
import math
from functools import partial

import jax
import jax.numpy as jnp
from jax import lax
from jax.experimental import pallas as pl
from jax.experimental.pallas import tpu as pltpu

_VMEM_LIMIT_BYTES = 32 * 1024 * 1024  # explicit: > v5e's 16 MiB default, safe on v6e/v7x


def _choose_t_tile(C, T):
    """Lane-dense time tile.

    Short sequences: one full-T tile (block == full dim, layout-legal).
    Long sequences: a multiple of 128 sized so the conv kernel's double-buffered f32
    (C, tT) input+output slabs stay ~<= 8 MiB, leaving room for the per-batch (K, C, C)
    weight block inside the 32 MiB scoped-VMEM budget.
    """
    if T <= 512:
        return T
    cap = (8 * 1024 * 1024) // (16 * C)          # 16 B/elem = 2(in)+2(out) buffers, f32
    cap = max(128, min(1024, (cap // 128) * 128))
    for cand in (1024, 512, 256, 128):
        if cand <= cap and T % cand == 0:        # prefer tiles dividing T (no pad copy)
            return cand
    return cap


def _pool_kernel(x_ref, psum_ref):
    """Accumulate the time-sum of x.  grid = (B, nT); the nT axis is a reduction."""
    @pl.when(pl.program_id(1) == 0)
    def _init():
        psum_ref[...] = jnp.zeros_like(psum_ref)

    psum_ref[...] += jnp.sum(x_ref[...].astype(jnp.float32), axis=-1, keepdims=True)


def _dynconv_kernel(w_ref, x_ref, halo_ref, o_ref):
    """Per-sample dynamic conv over time for one (batch, time-tile) grid cell.

    w_ref    : (K, C, C)  dynamic weights of this batch, [k, c_out, c_in]
    x_ref    : (C, tT)    current time tile of x
    halo_ref : (C, 2*pad) [pad cols left of the tile | pad cols right of the tile]
    o_ref    : (C, tT)
    """
    K = w_ref.shape[0]
    pad = (K - 1) // 2
    tT = o_ref.shape[-1]

    halo = halo_ref[...]
    win = jnp.concatenate([halo[:, :pad], x_ref[...], halo[:, pad:]],
                          axis=-1).astype(jnp.float32)        # (C, tT + 2*pad)

    acc = jnp.dot(w_ref[0], win[:, 0:tT], preferred_element_type=jnp.float32)
    for k in range(1, K):                                     # static unroll, K is small
        acc = acc + jnp.dot(w_ref[k], win[:, k:k + tT],
                            preferred_element_type=jnp.float32)
    o_ref[...] = acc.astype(o_ref.dtype)


@partial(jax.jit, static_argnames=("ksize", "M", "G"))
def contextnet_weight_module(x, input_lengths, w_fc1, b_fc1, w_fc2, *,
                             ksize=5, M=2, G=2):
    """Pallas forward of ContextNetWeightModule.

    x             : (B, C, T) float
    input_lengths : (B,) int
    w_fc1         : (M*C, C)        == wn_fc1.weight[:, :, 0]
    b_fc1         : (M*C,)          == wn_fc1.bias
    w_fc2         : (C*C*K, M//G)   == wn_fc2.weight[:, :, 0]
    returns       : (B, C, T)
    """
    B, C, T = x.shape
    K = ksize
    pad = (K - 1) // 2
    assert (M * C) % (G * C) == 0, "wn_fc2 in_channels must be divisible by groups"
    assert (C * C * K) % (G * C) == 0, "wn_fc2 out_channels must be divisible by groups"
    ipg = M // G                       # wn_fc2 input channels per group
    opg = (C * C * K) // (G * C)       # wn_fc2 output channels per group

    tT = _choose_t_tile(C, T)
    nT = -(-T // tT)
    T_round = nT * tT
    x_main = x if T_round == T else jnp.pad(x, ((0, 0), (0, 0), (0, T_round - T)))

    # ---- phase 1: pooled time sums (Pallas streaming reduction over T tiles) ----
    psum = pl.pallas_call(
        _pool_kernel,
        out_shape=jax.ShapeDtypeStruct((B, C, 1), jnp.float32),
        grid=(B, nT),
        in_specs=[pl.BlockSpec((None, C, tT), lambda b, ti: (b, 0, ti))],
        out_specs=pl.BlockSpec((None, C, 1), lambda b, ti: (b, 0, 0)),
        compiler_params=pltpu.CompilerParams(
            dimension_semantics=("parallel", "arbitrary"),
            vmem_limit_bytes=_VMEM_LIMIT_BYTES),
    )(x_main)
    # Matches PyTorch exactly: sums over *all* T columns (assumes padding is zeroed)
    # and divides by the raw length (no divide-by-zero guard, as in the module).
    x_gap = psum[:, :, 0] / input_lengths.astype(jnp.float32)[:, None]    # (B, C)

    # ---- glue: weight-net (parameter-sized math, outside the streaming kernels) ----
    h = jax.nn.sigmoid(x_gap @ w_fc1.T + b_fc1[None, :])                  # (B, M*C)
    grp = jnp.arange(C * C * K) // opg                                    # group of each out ch
    h_g = h.reshape(B, G * C, ipg)[:, grp, :]                             # (B, C*C*K, ipg)
    xw = jnp.einsum("oj,boj->bo", w_fc2.astype(jnp.float32),
                    h_g.astype(jnp.float32))                              # (B, C*C*K)
    w_dyn = xw.reshape(B, C, C, K).transpose(0, 3, 1, 2)                  # (B, K, c_out, c_in)
    w_dyn = w_dyn.astype(jnp.float32)

    # ---- halo columns per time tile (so x streams in non-overlapping tiles) ----
    x_ext = jnp.pad(x_main, ((0, 0), (0, 0), (pad, pad)))
    starts = jnp.arange(nT) * tT
    local = jnp.concatenate([jnp.arange(pad), tT + pad + jnp.arange(pad)])
    hidx = (starts[:, None] + local[None, :]).reshape(-1)                 # (nT * 2*pad,)
    halo = jnp.take(x_ext, hidx, axis=2).reshape(B, C, nT, 2 * pad)
    halo = halo.transpose(0, 2, 1, 3)                                     # (B, nT, C, 2*pad)

    # ---- phase 2: dynamic per-sample conv (Pallas, lane-dense streaming over T) ----
    out = pl.pallas_call(
        _dynconv_kernel,
        out_shape=jax.ShapeDtypeStruct((B, C, T), x.dtype),
        grid=(B, nT),
        in_specs=[
            pl.BlockSpec((None, K, C, C), lambda b, ti: (b, 0, 0, 0)),     # resident per b
            pl.BlockSpec((None, C, tT), lambda b, ti: (b, 0, ti)),
            pl.BlockSpec((None, None, C, 2 * pad), lambda b, ti: (b, ti, 0, 0)),
        ],
        out_specs=pl.BlockSpec((None, C, tT), lambda b, ti: (b, 0, ti)),
        compiler_params=pltpu.CompilerParams(
            dimension_semantics=("parallel", "parallel"),
            vmem_limit_bytes=_VMEM_LIMIT_BYTES),
    )(w_dyn, x_main, halo)
    return out


def _reference(x, input_lengths, w_fc1, b_fc1, w_fc2, *, ksize=5, M=2, G=2):
    """Pure-JAX reference mirroring the PyTorch module op-for-op (XLA grouped convs)."""
    B, C, T = x.shape
    K = ksize
    pad = (K - 1) // 2
    dn = ("NCH", "OIH", "NCH")

    x_gap = x.sum(axis=2) / input_lengths.astype(x.dtype)[:, None]          # (B, C)
    h = lax.conv_general_dilated(x_gap[:, :, None], w_fc1[:, :, None],
                                 (1,), "VALID", dimension_numbers=dn)        # (B, M*C, 1)
    h = jax.nn.sigmoid(h + b_fc1[None, :, None])
    xw = lax.conv_general_dilated(h, w_fc2[:, :, None], (1,), "VALID",
                                  feature_group_count=G * C,
                                  dimension_numbers=dn)                      # (B, C*C*K, 1)
    w_dyn = xw[:, :, 0].reshape(B, C, C, K)                                  # per-sample OIH

    def per_sample(xb, wb):
        return lax.conv_general_dilated(xb[None], wb, (1,), [(pad, pad)],
                                        dimension_numbers=dn)[0]

    return jax.vmap(per_sample)(x, w_dyn)


if __name__ == "__main__":
    B, C, T = 2, 8, 16
    KSIZE, M, G = 5, 2, 2

    key = jax.random.PRNGKey(0)
    kx, k1, k2, k3 = jax.random.split(key, 4)

    x = jax.random.normal(kx, (B, C, T), dtype=jnp.float32)
    input_lengths = jnp.array([T, 11], dtype=jnp.int32)

    # PyTorch-style uniform(-1/sqrt(fan_in), 1/sqrt(fan_in)) inits.
    bnd1 = 1.0 / math.sqrt(C)                      # wn_fc1: fan_in = C * 1
    w_fc1 = jax.random.uniform(k1, (M * C, C), jnp.float32, -bnd1, bnd1)
    b_fc1 = jax.random.uniform(k2, (M * C,), jnp.float32, -bnd1, bnd1)
    bnd2 = 1.0 / math.sqrt(M // G)                 # wn_fc2: fan_in = (M//G) * 1
    w_fc2 = jax.random.uniform(k3, (C * C * KSIZE, M // G), jnp.float32, -bnd2, bnd2)

    out = contextnet_weight_module(x, input_lengths, w_fc1, b_fc1, w_fc2,
                                   ksize=KSIZE, M=M, G=G)
    out = jax.block_until_ready(out)

    ref = _reference(x, input_lengths, w_fc1, b_fc1, w_fc2, ksize=KSIZE, M=M, G=G)
    assert out.shape == (B, C, T)
    max_err = float(jnp.max(jnp.abs(out - ref)))
    assert jnp.allclose(out, ref, atol=1e-3, rtol=1e-3), (
        "mismatch vs reference, max abs err = %g" % max_err)

    print("KERNEL_OK")
</pallas_src>

<mosaic_0001>
module attributes {stable_mosaic.version = 11 : i64} {
  func.func @_pool_kernel(%arg0: i32, %arg1: i32, %arg2: memref<1x8x16xf32, #tpu.memory_space<vmem>>, %arg3: memref<1x8x1xf32, #tpu.memory_space<vmem>>) attributes {dimension_semantics = [#tpu.dimension_semantics<parallel>, #tpu.dimension_semantics<arbitrary>], iteration_bounds = array<i64: 2, 1>, scalar_prefetch = 0 : i64, scratch_operands = 0 : i64, tpu.core_type = #tpu.core_type<tc>, window_params = [{transform_indices = @transform_0, window_bounds = array<i64: 1, 8, 16>}, {transform_indices = @transform_1, window_bounds = array<i64: 1, 8, 1>}]} {
    %c0_i32 = arith.constant 0 : i32
    %0 = arith.cmpi eq, %arg1, %c0_i32 : i32
    %1 = arith.extui %0 : i1 to i32
    %c0_i32_0 = arith.constant 0 : i32
    %2 = arith.cmpi ne, %1, %c0_i32_0 : i32
    scf.if %2 {
      %cst_9 = arith.constant 0.000000e+00 : f32
      %13 = vector.broadcast %cst_9 : f32 to vector<8x1xf32>
      %c0_10 = arith.constant 0 : index
      %c0_11 = arith.constant 0 : index
      %c0_12 = arith.constant 0 : index
      %14 = vector.load %arg3[%c0_10, %c0_11, %c0_12] : memref<1x8x1xf32, #tpu.memory_space<vmem>>, vector<1x8x1xf32>
      %15 = vector.shape_cast %14 : vector<1x8x1xf32> to vector<8x1xf32>
      %16 = vector.shape_cast %13 : vector<8x1xf32> to vector<1x8x1xf32>
      tpu.vector_store %arg3[%c0_10, %c0_11, %c0_12], %16 {strides = array<i32>} : memref<1x8x1xf32, #tpu.memory_space<vmem>>, vector<1x8x1xf32>,
    } else {
    }
    %c0 = arith.constant 0 : index
    %c0_1 = arith.constant 0 : index
    %c0_2 = arith.constant 0 : index
    %3 = vector.load %arg3[%c0, %c0_1, %c0_2] : memref<1x8x1xf32, #tpu.memory_space<vmem>>, vector<1x8x1xf32>
    %4 = vector.shape_cast %3 : vector<1x8x1xf32> to vector<8x1xf32>
    %c0_3 = arith.constant 0 : index
    %c0_4 = arith.constant 0 : index
    %c0_5 = arith.constant 0 : index
    %5 = vector.load %arg2[%c0_3, %c0_4, %c0_5] : memref<1x8x16xf32, #tpu.memory_space<vmem>>, vector<1x8x16xf32>
    %6 = vector.shape_cast %5 : vector<1x8x16xf32> to vector<8x16xf32>
    %cst = arith.constant dense<0.000000e+00> : vector<8xf32>
    %7 = vector.multi_reduction <add>, %6, %cst [1] : vector<8x16xf32> to vector<8xf32>
    %8 = vector.shape_cast %7 : vector<8xf32> to vector<8x1xf32>
    %9 = arith.addf %4, %8 : vector<8x1xf32>
    %c0_6 = arith.constant 0 : index
    %c0_7 = arith.constant 0 : index
    %c0_8 = arith.constant 0 : index
    %10 = vector.load %arg3[%c0_6, %c0_7, %c0_8] : memref<1x8x1xf32, #tpu.memory_space<vmem>>, vector<1x8x1xf32>
    %11 = vector.shape_cast %10 : vector<1x8x1xf32> to vector<8x1xf32>
    %12 = vector.shape_cast %9 : vector<8x1xf32> to vector<1x8x1xf32>
    tpu.vector_store %arg3[%c0_6, %c0_7, %c0_8], %12 {strides = array<i32>} : memref<1x8x1xf32, #tpu.memory_space<vmem>>, vector<1x8x1xf32>,
    return
  }
  func.func @transform_0(%arg0: i32, %arg1: i32) -> (i32, i32, i32) {
    %c0_i32 = arith.constant 0 : i32
    %c0_i32_0 = arith.constant 0 : i32
    return %arg0, %c0_i32, %arg1 : i32, i32, i32
  }
  func.func @transform_1(%arg0: i32, %arg1: i32) -> (i32, i32, i32) {
    %c0_i32 = arith.constant 0 : i32
    %c0_i32_0 = arith.constant 0 : i32
    %c0_i32_1 = arith.constant 0 : i32
    return %arg0, %c0_i32, %c0_i32_0 : i32, i32, i32
  }
}

module attributes {stable_mosaic.version = 11 : i64} {
  func.func @_dynconv_kernel(%arg0: i32, %arg1: i32, %arg2: memref<1x5x8x8xf32, #tpu.memory_space<vmem>>, %arg3: memref<1x8x16xf32, #tpu.memory_space<vmem>>, %arg4: memref<1x1x8x4xf32, #tpu.memory_space<vmem>>, %arg5: memref<1x8x16xf32, #tpu.memory_space<vmem>>) attributes {dimension_semantics = [#tpu.dimension_semantics<parallel>, #tpu.dimension_semantics<parallel>], iteration_bounds = array<i64: 2, 1>, scalar_prefetch = 0 : i64, scratch_operands = 0 : i64, tpu.core_type = #tpu.core_type<tc>, window_params = [{transform_indices = @transform_0, window_bounds = array<i64: 1, 5, 8, 8>}, {transform_indices = @transform_1, window_bounds = array<i64: 1, 8, 16>}, {transform_indices = @transform_2, window_bounds = array<i64: 1, 1, 8, 4>}, {transform_indices = @transform_3, window_bounds = array<i64: 1, 8, 16>}]} {
    %c0 = arith.constant 0 : index
    %c0_0 = arith.constant 0 : index
    %c0_1 = arith.constant 0 : index
    %c0_2 = arith.constant 0 : index
    %0 = vector.load %arg4[%c0, %c0_0, %c0_1, %c0_2] : memref<1x1x8x4xf32, #tpu.memory_space<vmem>>, vector<1x1x8x4xf32>
    %1 = vector.shape_cast %0 : vector<1x1x8x4xf32> to vector<8x4xf32>
    %2 = vector.extract_strided_slice %1 {offsets = [0, 0], sizes = [8, 2], strides = [1, 1]} : vector<8x4xf32> to vector<8x2xf32>
    %c0_3 = arith.constant 0 : index
    %c0_4 = arith.constant 0 : index
    %c0_5 = arith.constant 0 : index
    %3 = vector.load %arg3[%c0_3, %c0_4, %c0_5] : memref<1x8x16xf32, #tpu.memory_space<vmem>>, vector<1x8x16xf32>
    %4 = vector.shape_cast %3 : vector<1x8x16xf32> to vector<8x16xf32>
    %5 = vector.extract_strided_slice %1 {offsets = [0, 2], sizes = [8, 2], strides = [1, 1]} : vector<8x4xf32> to vector<8x2xf32>
    %6 = tpu.concatenate %2, %4, %5 in 1 : vector<8x2xf32>, vector<8x16xf32>, vector<8x2xf32> -> vector<8x20xf32>
    %c0_6 = arith.constant 0 : index
    %c0_7 = arith.constant 0 : index
    %c0_8 = arith.constant 0 : index
    %c0_9 = arith.constant 0 : index
    %7 = vector.load %arg2[%c0_6, %c0_7, %c0_8, %c0_9] : memref<1x5x8x8xf32, #tpu.memory_space<vmem>>, vector<1x1x8x8xf32>
    %8 = vector.shape_cast %7 : vector<1x1x8x8xf32> to vector<8x8xf32>
    %9 = vector.extract_strided_slice %6 {offsets = [0, 0], sizes = [8, 16], strides = [1, 1]} : vector<8x20xf32> to vector<8x16xf32>
    %cst = arith.constant dense<0.000000e+00> : vector<8x16xf32>
    %10 = tpu.matmul %8, %9, %cst {dimension_numbers = #tpu.dot_dimension_numbers<[1], [0], [0], [1], [0, 0, 1, 1], [], []>} : vector<8x8xf32>, vector<8x16xf32>, vector<8x16xf32> -> vector<8x16xf32>
    %c0_10 = arith.constant 0 : index
    %c1 = arith.constant 1 : index
    %c0_11 = arith.constant 0 : index
    %c0_12 = arith.constant 0 : index
    %11 = vector.load %arg2[%c0_10, %c1, %c0_11, %c0_12] : memref<1x5x8x8xf32, #tpu.memory_space<vmem>>, vector<1x1x8x8xf32>
    %12 = vector.shape_cast %11 : vector<1x1x8x8xf32> to vector<8x8xf32>
    %13 = vector.extract_strided_slice %6 {offsets = [0, 1], sizes = [8, 16], strides = [1, 1]} : vector<8x20xf32> to vector<8x16xf32>
    %cst_13 = arith.constant dense<0.000000e+00> : vector<8x16xf32>
    %14 = tpu.matmul %12, %13, %cst_13 {dimension_numbers = #tpu.dot_dimension_numbers<[1], [0], [0], [1], [0, 0, 1, 1], [], []>} : vector<8x8xf32>, vector<8x16xf32>, vector<8x16xf32> -> vector<8x16xf32>
    %15 = arith.addf %10, %14 : vector<8x16xf32>
    %c0_14 = arith.constant 0 : index
    %c2 = arith.constant 2 : index
    %c0_15 = arith.constant 0 : index
    %c0_16 = arith.constant 0 : index
    %16 = vector.load %arg2[%c0_14, %c2, %c0_15, %c0_16] : memref<1x5x8x8xf32, #tpu.memory_space<vmem>>, vector<1x1x8x8xf32>
    %17 = vector.shape_cast %16 : vector<1x1x8x8xf32> to vector<8x8xf32>
    %18 = vector.extract_strided_slice %6 {offsets = [0, 2], sizes = [8, 16], strides = [1, 1]} : vector<8x20xf32> to vector<8x16xf32>
    %cst_17 = arith.constant dense<0.000000e+00> : vector<8x16xf32>
    %19 = tpu.matmul %17, %18, %cst_17 {dimension_numbers = #tpu.dot_dimension_numbers<[1], [0], [0], [1], [0, 0, 1, 1], [], []>} : vector<8x8xf32>, vector<8x16xf32>, vector<8x16xf32> -> vector<8x16xf32>
    %20 = arith.addf %15, %19 : vector<8x16xf32>
    %c0_18 = arith.constant 0 : index
    %c3 = arith.constant 3 : index
    %c0_19 = arith.constant 0 : index
    %c0_20 = arith.constant 0 : index
    %21 = vector.load %arg2[%c0_18, %c3, %c0_19, %c0_20] : memref<1x5x8x8xf32, #tpu.memory_space<vmem>>, vector<1x1x8x8xf32>
    %22 = vector.shape_cast %21 : vector<1x1x8x8xf32> to vector<8x8xf32>
    %23 = vector.extract_strided_slice %6 {offsets = [0, 3], sizes = [8, 16], strides = [1, 1]} : vector<8x20xf32> to vector<8x16xf32>
    %cst_21 = arith.constant dense<0.000000e+00> : vector<8x16xf32>
    %24 = tpu.matmul %22, %23, %cst_21 {dimension_numbers = #tpu.dot_dimension_numbers<[1], [0], [0], [1], [0, 0, 1, 1], [], []>} : vector<8x8xf32>, vector<8x16xf32>, vector<8x16xf32> -> vector<8x16xf32>
    %25 = arith.addf %20, %24 : vector<8x16xf32>
    %c0_22 = arith.constant 0 : index
    %c4 = arith.constant 4 : index
    %c0_23 = arith.constant 0 : index
    %c0_24 = arith.constant 0 : index
    %26 = vector.load %arg2[%c0_22, %c4, %c0_23, %c0_24] : memref<1x5x8x8xf32, #tpu.memory_space<vmem>>, vector<1x1x8x8xf32>
    %27 = vector.shape_cast %26 : vector<1x1x8x8xf32> to vector<8x8xf32>
    %28 = vector.extract_strided_slice %6 {offsets = [0, 4], sizes = [8, 16], strides = [1, 1]} : vector<8x20xf32> to vector<8x16xf32>
    %cst_25 = arith.constant dense<0.000000e+00> : vector<8x16xf32>
    %29 = tpu.matmul %27, %28, %cst_25 {dimension_numbers = #tpu.dot_dimension_numbers<[1], [0], [0], [1], [0, 0, 1, 1], [], []>} : vector<8x8xf32>, vector<8x16xf32>, vector<8x16xf32> -> vector<8x16xf32>
    %30 = arith.addf %25, %29 : vector<8x16xf32>
    %c0_26 = arith.constant 0 : index
    %c0_27 = arith.constant 0 : index
    %c0_28 = arith.constant 0 : index
    %31 = vector.load %arg5[%c0_26, %c0_27, %c0_28] : memref<1x8x16xf32, #tpu.memory_space<vmem>>, vector<1x8x16xf32>
    %32 = vector.shape_cast %31 : vector<1x8x16xf32> to vector<8x16xf32>
    %33 = vector.shape_cast %30 : vector<8x16xf32> to vector<1x8x16xf32>
    tpu.vector_store %arg5[%c0_26, %c0_27, %c0_28], %33 {strides = array<i32>} : memref<1x8x16xf32, #tpu.memory_space<vmem>>, vector<1x8x16xf32>,
    return
  }
  func.func @transform_0(%arg0: i32, %arg1: i32) -> (i32, i32, i32, i32) {
    %c0_i32 = arith.constant 0 : i32
    %c0_i32_0 = arith.constant 0 : i32
    %c0_i32_1 = arith.constant 0 : i32
    %c0_i32_2 = arith.constant 0 : i32
    return %arg0, %c0_i32, %c0_i32_0, %c0_i32_1 : i32, i32, i32, i32
  }
  func.func @transform_1(%arg0: i32, %arg1: i32) -> (i32, i32, i32) {
    %c0_i32 = arith.constant 0 : i32
    %c0_i32_0 = arith.constant 0 : i32
    return %arg0, %c0_i32, %arg1 : i32, i32, i32
  }
  func.func @transform_2(%arg0: i32, %arg1: i32) -> (i32, i32, i32, i32) {
    %c0_i32 = arith.constant 0 : i32
    %c0_i32_0 = arith.constant 0 : i32
    %c0_i32_1 = arith.constant 0 : i32
    return %arg0, %arg1, %c0_i32, %c0_i32_0 : i32, i32, i32, i32
  }
  func.func @transform_3(%arg0: i32, %arg1: i32) -> (i32, i32, i32) {
    %c0_i32 = arith.constant 0 : i32
    %c0_i32_0 = arith.constant 0 : i32
    return %arg0, %c0_i32, %arg1 : i32, i32, i32
  }
}

</mosaic_0001>

<bundles_post_ra>
// kernel: contextnet_weight_module.2
= control target key start
LH: loop header
LB: loop body
LE: loop exit
PB: predicated region body
PF: predicated region fallthrough
CT: control target
= control target key end

     0   :  { %6 = vsyncpa [#allocation3], 0  ;;  %s495_s0 = inlined_call_operand.hbm [shape: f32[2,8,16], index: 0, kind: input, shape index: {}]   ;;  %s496_s1 = inlined_call_operand.vmem [shape: f32[2,8,1], index: 1, kind: output, shape index: {}]  }
   0x1   :  { %8 = vsyncpa [#allocation3 + $0x1], 0  ;;  %s395_s6 = smov 0   ;;  %s397_s7 = smov 0  }
   0x2   :  { %s399_s8 = smov 0   ;;  %s401_s9 = smov 0  }
   0x3   :  { %s403_s10 = smov 0   ;;  %s405_s11 = smov 0  }
   0x4 LB: > { %s236_s12 = sadd.s32 4294967295, %s381_s11   ;;  %s26_s13 = sadd.s32 1, %s377_s10  ;;  %s381_s11 = sphi %s405_s11, %s14_s11   ;;  %s377_s10 = sphi %s403_s10, %s504_s10   ;;  %s373_s9 = sphi %s401_s9, %s503_s9   ;;  %s369_s8 = sphi %s399_s8, %s502_s8   ;;  %s365_s7 = sphi %s397_s7, %s501_s7   ;;  %s361_s6 = sphi %s395_s6, %s500_s6  }
   0x5   : > { %p28_p0 = scmp.ge.s32.totalorder %s26_s13, 2  ;;  %s35_s14 = sadd.s32 1, %s369_s8 }
   0x6   : > { %p42_p1 = scmp.ne.s32.totalorder %s369_s8, %s365_s7  ;;  %p43_p2 = scmp.eq.s32.totalorder %s381_s11, 0 }
   0x7   : > { %s506_s13 = smov (%p28_p0, %s26_s13), 0  ;;  %p48_p4 = scmp.ne.s32.totalorder %s365_s7, %s361_s6 }
   0x8   : > { %p431_p3 = por %p43_p2, %p42_p1  ;;  %s30_s16 = ssub.s32 %s377_s10, %s506_s13 }
   0x9   : > { %p49_p5 = scmp.eq.s32.totalorder %s236_s12, 0  ;;  %p33_p6 = scmp.eq.s32.totalorder %s30_s16, 0 }
   0xa   : > { %p253_p8 = scmp.lt.s32.totalorder %s381_s11, 2  ;;  %s98_s19 = sand.u32 1, %s369_s8  }
   0xb   : > { %p438_p7 = por %p49_p5, %p48_p4  ;;  %s241_s20 = sshll.u32 %s377_s10, 7 }
   0xc   : > { %s444_s18 = scalar_select %p33_p6, %s369_s8, %s35_s14  }
   0xd   : > { %s240_s21 = sshll.u32 %s98_s19, 3  ;;  %s108_s24 = scalar_lea.hbm %s495_s0, %s241_s20 }
   0xe   : > { %s102_s25 = scalar_lea.vmem [#allocation2], %s240_s21  ;;  %p453_p9 = pnand %p253_p8, %p431_p3 }
   0xf   : > { %s110_s26 = sshll.u32 %s102_s25, 4  ;;  %p242_p10 = scmp.ge.s32.totalorder %s381_s11, 1  ;;  %s111_s26 = int_to_ptr.vmem [resolvable:$true] %s110_s26 }
  0x10   : > { %p115_p11 = scmp.lt.s32.totalorder %s381_s11, 3  ;;  %s99_s28 = scalar_lea.sflag [#allocation3], %s98_s19 }
  0x11   : > { %p305_p12 = pneg %p453_p9  ;;  %s316_s29 = scalar_lea.vmem %s111_s26, 128 }
  0x12   : > { %p317_p13 = scmp.ne.s32.totalorder %s111_s26, %s316_s29  ;;  %s383_s30 = smov [#allocation2]  }
  0x13   : > { %s321_s2 = sshll.u32 %s383_s30, 4  ;;  %s322_s2 = int_to_ptr.vmem [resolvable:$false] %s321_s2 }
  0x14   : > { %p319_p0 = pnand %p317_p13, %p305_p12  ;;  %s323_s3 = scalar_lea.vmem %s322_s2, 256 }
  0x15   : > { %p324_p2 = scmp.lt.s32.totalorder %s111_s26, %s322_s2  ;;  %p325_p3 = scmp.lt.s32.totalorder %s323_s3, %s316_s29 }
  0x16   : > { %p320_p1 = pneg %p319_p0 }
  0x17   : > { %p326_p4 = por %p325_p3, %p324_p2 }
  0x19   : > { %p327_p5 = pnand %p326_p4, %p320_p1 }
  0x1b   : > { %330 = shalt.err (!%p327_p5)
}
  0x1c   : > { %252 = dma.hbm_to_vmem [thread:$0]  (!%p453_p9), %s108_s24, 128, %s111_s26, %s99_s28  }
  0x1d   : > { %p116_p6 = pnand %p242_p10, %p115_p11 }
  0x1e   : > { %s121_s4 = sand.u32 (!%p116_p6), 1, %s365_s7  }
  0x1f   : > { %119 = sbr.rel (%p116_p6) target bundleno = 180 (0xb4), region = 24  ;;  %s243_s5 = sshll.u32 (!%p116_p6), %s121_s4, 3 }
  0x20   : > { %s122_s6 = scalar_lea.sflag (!%p116_p6), [#allocation3], %s121_s4  ;;  %s125_s12 = scalar_lea.vmem (!%p116_p6), [#allocation2], %s243_s5 }
  0x24   : > { %356 = dma.done.wait (%p438_p7), %s122_s6, 128  }
  0x25   : > { %358 = vsyncadd (%p438_p7), %s122_s6, 4294967168  ;;  %p143_p8 = scmp.lt.s32.totalorder %s373_s9, 1  ;;  %vm151_vm0 = vcmask 7168   ;;  %vm155_vm1 = vcmask 130048   ;;  %v384_v0 = vmov 0.0   ;;  %v154_v1 = vld [vmem:[%s125_s12] sm:$0xff] }
  0x26   : > { %v156_v2 = vsel %vm155_vm1, %v154_v1, 0.0 }
  0x27   : > { %s508_s9 = smov (!%p143_p8, %s373_s9), 1  ;;  %157 = vadd.xlane.f32.xlu0 %v156_v2 }
  0x28   : > { %s244_s14 = sshll.u32 %s508_s9, 3 }
  0x29   : > { %s146_s19 = scalar_lea.vmem %s496_s1, %s244_s14 }
  0x2a   : > { %152 = vst.msk [vmem:[%s146_s19] sm:$0xff] %vm151_vm0, %v384_v0 }
  0x31   : > { %v153_v3 = vld [vmem:[%s146_s19] sm:$0xff] }
  0xb0   : > { %v158_v4 = vpop.xlane.xlu0 %157 }
  0xb1   : > { %v159_v5 = vadd.f32 %v158_v4, %v153_v3 }
  0xb3   : > { %161 = vst.msk [vmem:[%s146_s19] sm:$0xff] %vm151_vm0, %v159_v5 }
  0xb4 PF: > { %s14_s11 = sadd.s32 1, %s381_s11   ;;  %s500_s6 = smov %s365_s7 }
  0xb5   : > { %p11_p7 = scmp.ge.s32.totalorder %s14_s11, 4   ;;  %s501_s7 = smov %s369_s8 }
  0xb6   : > { %s502_s8 = smov %s444_s18  ;;  %s503_s9 = smov %s377_s10 }
  0xb7   : > { %s504_s10 = smov %s506_s13  ;;  %13 = sbr.rel (!%p11_p7) target bundleno = 4 (0x4), region = 68 }
  0xbc   :  { %181 = vsyncpa [#allocation3], 1 }
  0xbd   :  { %183 = vsyncpa [#allocation3 + $0x1], 1 }

// kernel: contextnet_weight_module.3
= control target key start
LH: loop header
LB: loop body
LE: loop exit
PB: predicated region body
PF: predicated region fallthrough
CT: control target
= control target key end

     0   :  { %8 = vsyncpa [#allocation3], 0  ;;  %s1115_s0 = inlined_call_operand.vmem [shape: f32[2,5,8,8], index: 0, kind: input, shape index: {}]   ;;  %s1116_s1 = inlined_call_operand.vmem [shape: f32[2,8,16], index: 1, kind: input, shape index: {}]   ;;  %s1117_s2 = inlined_call_operand.vmem [shape: f32[2,1,8,4], index: 2, kind: input, shape index: {}]   ;;  %s1118_s3 = inlined_call_operand.hbm [shape: f32[2,8,16], index: 3, kind: output, shape index: {}]  }
   0x1   :  { %10 = vsyncpa [#allocation3 + $0x1], 0  ;;  %s987_s12 = smov 0   ;;  %s989_s13 = smov 0  }
   0x2   :  { %s991_s14 = smov 0   ;;  %s993_s15 = smov 0  }
   0x3   :  { %s995_s16 = smov 0   ;;  %s997_s17 = smov 0  }
   0x4 LB: > { %s759_s18 = sadd.s32 4294967295, %s956_s17   ;;  %s760_s19 = sadd.s32 4294967294, %s956_s17   ;;  %s956_s17 = sphi %s997_s17, %s16_s17   ;;  %s952_s16 = sphi %s995_s16, %s1125_s16   ;;  %s948_s15 = sphi %s993_s15, %s1124_s15   ;;  %s944_s14 = sphi %s991_s14, %s1123_s14   ;;  %s940_s13 = sphi %s989_s13, %s1122_s13   ;;  %s936_s12 = sphi %s987_s12, %s1121_s12  }
   0x5   : > { %s28_s20 = sadd.s32 1, %s952_s16  ;;  %s119_s21 = sadd.s32 1, %s944_s14 }
   0x6   : > { %p30_p0 = scmp.ge.s32.totalorder %s28_s20, 2  ;;  %p129_p1 = scmp.ne.s32.totalorder %s944_s14, %s940_s13 }
   0x7   : > { %p130_p2 = scmp.eq.s32.totalorder %s759_s18, 1  ;;  %p135_p3 = scmp.ne.s32.totalorder %s940_s13, %s936_s12 }
   0x8   : > { %s1127_s20 = smov (%p30_p0, %s28_s20), 0  ;;  %p136_p5 = scmp.eq.s32.totalorder %s760_s19, 1 }
   0x9   : > { %p1027_p4 = por %p130_p2, %p129_p1  ;;  %s114_s23 = ssub.s32 %s952_s16, %s1127_s20 }
   0xa   : > { %p763_p6 = scmp.ge.s32.totalorder %s956_s17, 1  ;;  %p117_p7 = scmp.eq.s32.totalorder %s114_s23, 0 }
   0xb   : > { %p1034_p8 = por %p136_p5, %p135_p3  ;;  %p182_p9 = scmp.lt.s32.totalorder %s956_s17, 3 }
   0xc   : > { %s1040_s25 = scalar_select %p117_p7, %s944_s14, %s119_s21  }
   0xd   : > { %p183_p10 = pnand %p763_p6, %p182_p9 }
   0xe   : > { %p220_p11 = scmp.lt.s32.totalorder (!%p183_p10), %s948_s15, 1  ;;  %s959_s7 = smov (!%p183_p10), 2  }
   0xf   : > { %186 = sbr.rel (%p183_p10) target bundleno = 477 (0x1dd), region = 32  ;;  %s961_s8 = smov (!%p183_p10), 16  }
  0x10   : > { %s962_s19 = smov (!%p183_p10), 125   ;;  %s963_s21 = smov (!%p183_p10), 127  }
  0x11   : > { %s964_s23 = smov (!%p183_p10), 126   ;;  %s778_s29 = sshll.u32 (!%p183_p10), %s948_s15, 7 }
  0x14   : > { %v958_v0 = vmov 0.0   ;;  %s221_s26 = scalar_select %p220_p11, %s948_s15, 1  ;;  %vm960_vm0 = vmmov 0   ;;  %vm249_vm1 = vcmask 15360   ;;  %vm251_vm2 = vcmask 146432  }
  0x15   : > { %796 = vmatprep.subr.mxu1 %v958_v0  ;;  %791 = vmatprep.subr.mxu0 %v958_v0  ;;  %vm260_vm3 = vcmask 64512   ;;  %vm644_vm4 = vcmask 130048   ;;  %s966_s15 = smov [#allocation2]  }
  0x16   : > { %s766_s27 = sshll.u32 %s221_s26, 3  ;;  %798 = vmatprep.mubr.msk.f32.mxu1 %vm960_vm0, %v958_v0  ;;  %793 = vmatprep.mubr.msk.f32.mxu0 %vm960_vm0, %v958_v0  ;;  %s816_s9 = smul.u32 40, %s221_s26 }
  0x17   : > { %s231_s30 = scalar_lea.vmem %s1116_s1, %s766_s27  ;;  %s238_s6 = scalar_lea.vmem %s1117_s2, %s766_s27 }
  0x18   : > { %v240_v1 = vld [vmem:[%s231_s30] sm:$0xff]  ;;  %s1055_s18 = scalar_lea.vmem %s1115_s0, %s816_s9  ;;  %s965_s26 = smov 124  }
  0x19   : > { %242 = vrot.lane.b32.xlu0 %v240_v1, %s959_s7  ;;  %v239_v2 = vld [vmem:[%s238_s6] sm:$0xff]  ;;  %v768_v8 = vld [vmem:[%s1055_s18 + $0x8] sm:$0xff]  ;;  %v773_v11 = vld [vmem:[%s1055_s18 + $0x18] sm:$0xff]  ;;  %s217_s27 = sand.u32 1, %s940_s13   ;;  %s1075_s7 = scalar_lea.hbm %s1118_s3, %s778_s29 }
  0x1a   : > { %v253_v7 = vld [vmem:[%s1055_s18] sm:$0xff]  ;;  %v771_v12 = vld [vmem:[%s1055_s18 + $0x10] sm:$0xff]  ;;  %s764_s28 = sshll.u32 %s217_s27, 3  ;;  %s884_s10 = sshll.u32 %s966_s15, 4  ;;  %s885_s10 = int_to_ptr.vmem [resolvable:$false] %s884_s10 }
  0x1b   : > { %v775_v14 = vld [vmem:[%s1055_s18 + $0x20] sm:$0xff]  ;;  %s219_s30 = scalar_lea.vmem [#allocation2], %s764_s28  ;;  %s886_s11 = scalar_lea.vmem %s885_s10, 256 }
  0x1c   : > { %s661_s4 = sshll.u32 %s219_s30, 4  ;;  %s662_s4 = int_to_ptr.vmem [resolvable:$true] %s661_s4 }
  0x1d   : > { %246 = vrot.lane.b32.xlu0 %v239_v2, %s961_s8  ;;  %s647_s8 = scalar_lea.sflag [#allocation3], %s217_s27  ;;  %s880_s9 = scalar_lea.vmem %s662_s4, 128 }
  0x1e   : > { %p881_p12 = scmp.ne.s32.totalorder %s662_s4, %s880_s9  ;;  %p887_p1 = scmp.lt.s32.totalorder %s662_s4, %s885_s10 }
  0x1f   : > { %p888_p2 = scmp.lt.s32.totalorder %s886_s11, %s880_s9 }
  0x20   : > { %p882_p13 = pnand %p881_p12, %p1027_p4 }
  0x21   : > { %p889_p3 = por %p888_p2, %p887_p1 }
  0x22   : > { %p883_p0 = pneg %p882_p13 }
  0x24   : > { %p890_p5 = pnand %p889_p3, %p883_p0 }
  0x8b   : > { %v243_v3 = vpop.permute.xlu0 %242 }
  0x8c   : > { %v250_v4 = vsel %vm249_vm1, %v239_v2, %v243_v3 }
  0x8f   : > { %v247_v5 = vpop.permute.xlu0 %246 }
  0x90   : > { %v252_v6 = vsel %vm251_vm2, %v250_v4, %v247_v5 }
  0x91   : > { %488 = vrot.lane.b32.xlu0 %v252_v6, %s962_s19  ;;  %257 = vrot.lane.b32.xlu1 %v252_v6, %s963_s21 }
  0x92   : > { %797 = vmatpush3.msra.mxu1 %v252_v6 }
  0x93   : > { %806 = vmatprep.subr.mxu1 %v958_v0  ;;  %799 = vmatmul.mubr.msk.f32.vlgmr.msra.gmra.mxu1 %vm260_vm3, %v253_v7 }
  0x94   : > { %808 = vmatprep.mubr.msk.f32.mxu1 %vm960_vm0, %v958_v0 }
  0x95   : > { %409 = vrot.lane.b32.xlu1 %v252_v6, %s964_s23 }
  0x99   : > { %567 = vrot.lane.b32.xlu1 %v252_v6, %s965_s26 }
 0x103   : > { %v489_v9 = vpop.permute.xlu0 %488  ;;  %v258_v10 = vpop.permute.xlu1 %257 }
 0x104   : > { %792 = vmatpush3.msra.mxu0 %v258_v10  ;;  %807 = vmatpush3.msra.mxu1 %v489_v9 }
 0x105   : > { %794 = vmatmul.mubr.msk.f32.vlgmr.msra.gmra.mxu0 %vm260_vm3, %v768_v8  ;;  %801 = vmatprep.subr.mxu0 %v958_v0 }
 0x106   : > { %803 = vmatprep.mubr.msk.f32.mxu0 %vm960_vm0, %v958_v0  ;;  %809 = vmatmul.mubr.msk.f32.vlgmr.msra.gmra.mxu1 %vm260_vm3, %v773_v11 }
 0x107   : > { %v410_v13 = vpop.permute.xlu1 %409 }
 0x108   : > { %802 = vmatpush3.msra.mxu0 %v410_v13 }
 0x109   : > { %804 = vmatmul.mubr.msk.f32.vlgmr.msra.gmra.mxu0 %vm260_vm3, %v771_v12  ;;  %811 = vmatprep.subr.mxu0 %v958_v0 }
 0x10a   : > { %813 = vmatprep.mubr.msk.f32.mxu0 %vm960_vm0, %v958_v0 }
 0x10b   : > { %v568_v15 = vpop.permute.xlu1 %567 }
 0x10c   : > { %812 = vmatpush3.msra.mxu0 %v568_v15 }
 0x10d   : > { %814 = vmatmul.mubr.msk.f32.vlgmr.msra.gmra.mxu0 %vm260_vm3, %v775_v14 }
 0x153   : > { %v403_v16 = vpop.f32.mrf.mxu1 }
 0x155   : > { %v800_v17 = vpop.f32.mrf.mxu1 }
 0x1c5   : > { %v330_v18 = vpop.f32.mrf.mxu0 }
 0x1c6   : > { %v560_v19 = vpop.f32.mrf.mxu1  ;;  %v404_v21 = vadd.f32 %v403_v16, %v330_v18 }
 0x1c7   : > { %v795_v20 = vpop.f32.mrf.mxu0 }
 0x1c8   : > { %v810_v22 = vpop.f32.mrf.mxu1 }
 0x1c9   : > { %v481_v23 = vpop.f32.mrf.mxu0 }
 0x1ca   : > { %v485_v24 = vadd.f32 %v481_v23, %v404_v21 }
 0x1cb   : > { %v805_v25 = vpop.f32.mrf.mxu0 }
 0x1cc   : > { %v564_v26 = vadd.f32 %v560_v19, %v485_v24 }
 0x1cd   : > { %v639_v27 = vpop.f32.mrf.mxu0 }
 0x1ce   : > { %v643_v28 = vadd.f32 %v639_v27, %v564_v26 }
 0x1cf   : > { %v815_v29 = vpop.f32.mrf.mxu0 }
 0x1d0   : > { %645 = vst.msk [vmem:[%s219_s30] sm:$0xff] %vm644_vm4, %v643_v28 }
 0x1d1   : > { %893 = shalt.err (!%p890_p5)
}
 0x1d2   : > { %s894_s18 = scalar_lea.hbm %s1075_s7, 128  ;;  %s898_s23 = scalar_lea.hbm %s1118_s3, 256 }
 0x1d3   : > { %p895_p6 = scmp.ne.s32.totalorder %s1075_s7, %s894_s18  ;;  %p899_p10 = scmp.lt.s32.totalorder %s1075_s7, %s1118_s3 }
 0x1d4   : > { %p900_p11 = scmp.lt.s32.totalorder %s898_s23, %s894_s18 }
 0x1d5   : > { %p896_p7 = pnand %p895_p6, %p1027_p4 }
 0x1d6   : > { %p901_p12 = por %p900_p11, %p899_p10 }
 0x1d7   : > { %p897_p9 = pneg %p896_p7 }
 0x1d9   : > { %p902_p13 = pnand %p901_p12, %p897_p9 }
 0x1db   : > { %905 = shalt.err (!%p902_p13)
}
 0x1dc   : > { %817 = dma.vmem_to_hbm [thread:$0]  (%p1027_p4), %s662_s4, 128, %s1075_s7, %s647_s8  }
 0x1dd PF: > { %p823_p0 = scmp.ge.s32.totalorder %s956_s17, 2  ;;  %s673_s28 = sand.u32 1, %s936_s12  }
 0x1de   : > { %s674_s29 = scalar_lea.sflag [#allocation3], %s673_s28 }
 0x1df   : > { %p820_p1 = pnand %p823_p0, %p1034_p8 }
 0x1e1   : > { %p821_p2 = pneg %p820_p1 }
 0x1e3   : > { %931 = dma.done.wait (%p821_p2), %s674_s29, 128  }
 0x1e4   : > { %933 = vsyncadd (%p821_p2), %s674_s29, 4294967168  ;;  %s16_s17 = sadd.s32 1, %s956_s17   ;;  %s1121_s12 = smov %s940_s13 }
 0x1e5   : > { %p13_p3 = scmp.ge.s32.totalorder %s16_s17, 4   ;;  %s1122_s13 = smov %s944_s14 }
 0x1e6   : > { %s1123_s14 = smov %s1040_s25  ;;  %s1124_s15 = smov %s952_s16 }
 0x1e7   : > { %s1125_s16 = smov %s1127_s20  ;;  %15 = sbr.rel (!%p13_p3) target bundleno = 4 (0x4), region = 77 }
 0x1ec   :  { %679 = vsyncpa [#allocation3], 1 }
 0x1ed   :  { %681 = vsyncpa [#allocation3 + $0x1], 1 }

</bundles_post_ra>
